<compile_context>
chip_gen: v6e
topology: v6e:2x2x1
jax: 0.10.0
libtpu: 0.0.40
codegen_flags: <defaults>
</compile_context>

<pallas_src>
import functools

import jax
import jax.numpy as jnp
from jax.experimental import pallas as pl
from jax.experimental.pallas import tpu as pltpu

_LANE = 128
# Safe on every generation: above v5e's 16 MiB scoped default, below v7x's
# 64 MiB physical VMEM.
_VMEM_LIMIT_BYTES = 32 * 1024 * 1024


def _round_up(x, m):
    return ((x + m - 1) // m) * m


def _pick_tile(n, target):
    """Largest multiple of 128 that is <= target and divides n (n % 128 == 0)."""
    t = min(target, n)
    t -= t % _LANE
    while n % t:
        t -= _LANE
    return t


def _pad2(x, rows, cols):
    r, c = x.shape
    return jnp.pad(x, ((0, rows - r), (0, cols - c)))


def _pad3(x, d0, d1, d2):
    a, b, c = x.shape
    return jnp.pad(x, ((0, d0 - a), (0, d1 - b), (0, d2 - c)))


# ----------------------------------------------------------------------------
# Kernel 1: per-relation feature transform  Y[r] = X @ W[r]
# ----------------------------------------------------------------------------
def _xw_kernel(x_ref, w_ref, y_ref):
    # (TM, D_in) @ (D_in, D_out) -> per-relation transformed features.
    y_ref[0] = jnp.dot(
        x_ref[...], w_ref[...], preferred_element_type=jnp.float32
    ).astype(y_ref.dtype)


def relation_transform(x, w):
    """Y[r] = X @ W[r] for every relation.

    x: (N_pad, D_in_pad)  (bf16 or f32, lane-dense)
    w: (R, D_in_pad, D_out_pad)
    returns (R, N_pad, D_out_pad) in x.dtype.
    """
    n_pad, d_in = x.shape
    num_rels, _, d_out = w.shape
    tm = _pick_tile(n_pad, 512)

    return pl.pallas_call(
        _xw_kernel,
        out_shape=jax.ShapeDtypeStruct((num_rels, n_pad, d_out), x.dtype),
        grid_spec=pltpu.PrefetchScalarGridSpec(
            num_scalar_prefetch=0,
            grid=(num_rels, n_pad // tm),
            in_specs=[
                pl.BlockSpec((tm, d_in), lambda r, i: (i, 0)),
                pl.BlockSpec((pl.Squeezed(), d_in, d_out), lambda r, i: (r, 0, 0)),
            ],
            out_specs=pl.BlockSpec((1, tm, d_out), lambda r, i: (r, i, 0)),
        ),
        compiler_params=pltpu.CompilerParams(
            dimension_semantics=("parallel", "parallel"),
            vmem_limit_bytes=_VMEM_LIMIT_BYTES,
        ),
        cost_estimate=pl.CostEstimate(
            flops=2 * num_rels * n_pad * d_in * d_out,
            transcendentals=0,
            bytes_accessed=(
                num_rels * n_pad * d_in * x.dtype.itemsize
                + num_rels * d_in * d_out * w.dtype.itemsize
                + num_rels * n_pad * d_out * x.dtype.itemsize
            ),
        ),
    )(x, w)


# ----------------------------------------------------------------------------
# Kernel 2: adjacency aggregation  out = sum_r A_r @ Y_r + bias  (+ ReLU)
# ----------------------------------------------------------------------------
def _agg_kernel(a_ref, y_ref, b_ref, o_ref, *, apply_relu):
    r = pl.program_id(1)
    k = pl.program_id(2)

    # Output tile is resident across the (relation, src-tile) reduction axes;
    # accumulate directly into it (no scratch accumulator).
    @pl.when((r == 0) & (k == 0))
    def _():
        o_ref[...] = jnp.zeros_like(o_ref)

    # (TM, TK) @ (TK, D_out_pad), bf16 (or f32) inputs, f32 accumulation.
    o_ref[...] += jnp.dot(
        a_ref[...], y_ref[...], preferred_element_type=jnp.float32
    )

    @pl.when((r == pl.num_programs(1) - 1) & (k == pl.num_programs(2) - 1))
    def _():
        out = o_ref[...] + b_ref[...]
        if apply_relu:
            out = jnp.maximum(out, 0.0)
        o_ref[...] = out


def aggregate(adj, y, bias, *, apply_relu, tm_target=256, tk_target=512):
    """out[v] = bias + sum_r sum_u adj[r, v, u] * y[r, u, :]   (+ optional ReLU)

    adj:  (R, N_pad, N_pad)     weighted dense adjacency (bf16 or f32)
    y:    (R, N_pad, D_out_pad) per-relation transformed features
    bias: (1, D_out_pad) f32
    returns (N_pad, D_out_pad) f32.
    """
    num_rels, n_pad, _ = adj.shape
    d_out = y.shape[2]
    tm = _pick_tile(n_pad, tm_target)   # dst-row tile (parallel axis)
    tk = _pick_tile(n_pad, tk_target)   # src-col tile (reduction, innermost)
    grid = (n_pad // tm, num_rels, n_pad // tk)

    kernel = functools.partial(_agg_kernel, apply_relu=apply_relu)

    return pl.pallas_call(
        kernel,
        out_shape=jax.ShapeDtypeStruct((n_pad, d_out), jnp.float32),
        grid_spec=pltpu.PrefetchScalarGridSpec(
            num_scalar_prefetch=0,
            grid=grid,
            in_specs=[
                pl.BlockSpec((pl.Squeezed(), tm, tk), lambda m, r, k: (r, m, k)),
                pl.BlockSpec((pl.Squeezed(), tk, d_out), lambda m, r, k: (r, k, 0)),
                pl.BlockSpec((1, d_out), lambda m, r, k: (0, 0)),
            ],
            out_specs=pl.BlockSpec((tm, d_out), lambda m, r, k: (m, 0)),
        ),
        compiler_params=pltpu.CompilerParams(
            dimension_semantics=("parallel", "arbitrary", "arbitrary"),
            vmem_limit_bytes=_VMEM_LIMIT_BYTES,
        ),
        cost_estimate=pl.CostEstimate(
            flops=2 * num_rels * n_pad * n_pad * d_out,
            transcendentals=0,
            bytes_accessed=(
                num_rels * n_pad * n_pad * adj.dtype.itemsize
                + (n_pad // tm) * num_rels * n_pad * d_out * y.dtype.itemsize
                + n_pad * d_out * 4
            ),
        ),
    )(adj, y, bias)


# ----------------------------------------------------------------------------
# Glue (plain JAX): basis combination, adjacency build, padding, full forward
# ----------------------------------------------------------------------------
def basis_weights(coeff, basis):
    """W_r = sum_b coeff[r, b] * basis[b]  -> (R, D_in, D_out)."""
    return jnp.einsum("rb,bio->rio", coeff, basis)


def build_dense_adjacency(src, dst, etype, norm, num_rels, num_nodes):
    """Edge list -> per-relation dense weighted adjacency (glue, plain JAX)."""
    adj = jnp.zeros((num_rels, num_nodes, num_nodes), dtype=jnp.float32)
    adj = adj.at[etype, dst, src].add(norm)
    return adj


def rgcn_forward(params, adj, *, compute_dtype=jnp.bfloat16):
    """Full RGCN forward: relu(conv1(emb)) -> conv2 (lane-dense padded kernels)."""
    num_rels, num_nodes, _ = adj.shape
    h_dim = params["emb"].shape[1]
    out_dim = params["basis2"].shape[2]

    w1 = basis_weights(params["coeff1"], params["basis1"])   # (R, h, h)
    w2 = basis_weights(params["coeff2"], params["basis2"])   # (R, h, o)

    n_pad = _round_up(num_nodes, _LANE)
    h_pad = _round_up(h_dim, _LANE)
    o_pad = _round_up(out_dim, _LANE)

    adj_p = _pad3(adj, num_rels, n_pad, n_pad).astype(compute_dtype)
    x_p = _pad2(params["emb"], n_pad, h_pad).astype(compute_dtype)
    w1_p = _pad3(w1, num_rels, h_pad, h_pad).astype(compute_dtype)
    w2_p = _pad3(w2, num_rels, h_pad, o_pad).astype(compute_dtype)
    b1_p = _pad2(params["bias1"], 1, h_pad).astype(jnp.float32)
    b2_p = _pad2(params["bias2"], 1, o_pad).astype(jnp.float32)

    # Layer 1 (ReLU fused into the aggregation kernel's final step).
    y1 = relation_transform(x_p, w1_p)
    h = aggregate(adj_p, y1, b1_p, apply_relu=True)           # (n_pad, h_pad) f32
    # Padded feature columns / rows of h are exactly zero, so h feeds layer 2
    # directly without re-slicing.
    y2 = relation_transform(h.astype(compute_dtype), w2_p)
    out = aggregate(adj_p, y2, b2_p, apply_relu=False)        # (n_pad, o_pad) f32

    return out[:num_nodes, :out_dim]


def _reference_forward(params, adj):
    """Pure-JAX f32 reference for correctness checking."""
    x = params["emb"]
    w1 = basis_weights(params["coeff1"], params["basis1"])
    w2 = basis_weights(params["coeff2"], params["basis2"])
    prec = jax.lax.Precision.HIGHEST

    def layer(a, xx, ww, bb):
        return jnp.einsum("rvu,ud,rdo->vo", a, xx, ww, precision=prec) + bb

    h = jnp.maximum(layer(adj, x, w1, params["bias1"]), 0.0)
    return layer(adj, h, w2, params["bias2"])


if __name__ == "__main__":
    # Small synthetic graph / model sizes consistent with the module.
    num_nodes = 64
    h_dim = 32
    out_dim = 16
    num_rels = 3
    num_bases = num_rels
    num_edges = 256

    key = jax.random.PRNGKey(0)
    k_emb, k_b1, k_c1, k_b2, k_c2, k_src, k_dst, k_et, k_nm = jax.random.split(key, 9)

    # Deterministic parameter init (synthetic; not a checkpoint load).
    params = {
        "emb": jax.random.normal(k_emb, (num_nodes, h_dim), jnp.float32) * 0.1,
        "basis1": jax.random.normal(k_b1, (num_bases, h_dim, h_dim), jnp.float32) * 0.1,
        "coeff1": jax.random.normal(k_c1, (num_rels, num_bases), jnp.float32) * 0.1,
        "bias1": jnp.zeros((1, h_dim), jnp.float32),
        "basis2": jax.random.normal(k_b2, (num_bases, h_dim, out_dim), jnp.float32) * 0.1,
        "coeff2": jax.random.normal(k_c2, (num_rels, num_bases), jnp.float32) * 0.1,
        "bias2": jnp.zeros((1, out_dim), jnp.float32),
    }

    # Deterministic synthetic homogeneous graph with edge types and norms.
    src = jax.random.randint(k_src, (num_edges,), 0, num_nodes)
    dst = jax.random.randint(k_dst, (num_edges,), 0, num_nodes)
    etype = jax.random.randint(k_et, (num_edges,), 0, num_rels)
    norm = jax.random.uniform(k_nm, (num_edges,), jnp.float32, 0.1, 1.0)

    adj = build_dense_adjacency(src, dst, etype, norm, num_rels, num_nodes)

    ref = _reference_forward(params, adj)
    scale = float(jnp.maximum(jnp.max(jnp.abs(ref)), 1e-6))

    # Tight semantic check: f32 streaming path.
    out_f32 = jax.block_until_ready(
        rgcn_forward(params, adj, compute_dtype=jnp.float32)
    )
    assert out_f32.shape == (num_nodes, out_dim)
    err_f32 = float(jnp.max(jnp.abs(out_f32 - ref))) / scale
    assert err_f32 < 1e-2, f"f32 path mismatch vs reference: rel err {err_f32}"

    # Default perf path: bf16 adjacency/feature streaming, f32 accumulation.
    out_bf16 = jax.block_until_ready(rgcn_forward(params, adj))
    assert out_bf16.shape == (num_nodes, out_dim)
    err_bf16 = float(jnp.max(jnp.abs(out_bf16 - ref))) / scale
    assert err_bf16 < 5e-2, f"bf16 path mismatch vs reference: rel err {err_bf16}"

    print("KERNEL_OK")
</pallas_src>

<mosaic_0001>
module attributes {stable_mosaic.version = 11 : i64} {
  func.func @_xw_kernel(%arg0: i32, %arg1: i32, %arg2: memref<128x128xf32, #tpu.memory_space<vmem>>, %arg3: memref<1x128x128xf32, #tpu.memory_space<vmem>>, %arg4: memref<1x128x128xf32, #tpu.memory_space<vmem>>) attributes {dimension_semantics = [#tpu.dimension_semantics<parallel>, #tpu.dimension_semantics<parallel>], iteration_bounds = array<i64: 3, 1>, scalar_prefetch = 0 : i64, scratch_operands = 0 : i64, tpu.core_type = #tpu.core_type<tc>, window_params = [{transform_indices = @transform_0, window_bounds = array<i64: 128, 128>}, {transform_indices = @transform_1, window_bounds = array<i64: 1, 128, 128>}, {transform_indices = @transform_2, window_bounds = array<i64: 1, 128, 128>}]} {
    %c0 = arith.constant 0 : index
    %c0_0 = arith.constant 0 : index
    %0 = vector.load %arg2[%c0, %c0_0] : memref<128x128xf32, #tpu.memory_space<vmem>>, vector<128x128xf32>
    %c0_1 = arith.constant 0 : index
    %c0_2 = arith.constant 0 : index
    %c0_3 = arith.constant 0 : index
    %1 = vector.load %arg3[%c0_1, %c0_2, %c0_3] : memref<1x128x128xf32, #tpu.memory_space<vmem>>, vector<1x128x128xf32>
    %2 = vector.shape_cast %1 : vector<1x128x128xf32> to vector<128x128xf32>
    %cst = arith.constant dense<0.000000e+00> : vector<128x128xf32>
    %3 = tpu.matmul %0, %2, %cst {dimension_numbers = #tpu.dot_dimension_numbers<[1], [0], [0], [1], [0, 0, 1, 1], [], []>} : vector<128x128xf32>, vector<128x128xf32>, vector<128x128xf32> -> vector<128x128xf32>
    %c0_4 = arith.constant 0 : index
    %c0_5 = arith.constant 0 : index
    %c0_6 = arith.constant 0 : index
    %4 = vector.load %arg4[%c0_4, %c0_5, %c0_6] : memref<1x128x128xf32, #tpu.memory_space<vmem>>, vector<1x128x128xf32>
    %5 = vector.shape_cast %4 : vector<1x128x128xf32> to vector<128x128xf32>
    %6 = vector.shape_cast %3 : vector<128x128xf32> to vector<1x128x128xf32>
    tpu.vector_store %arg4[%c0_4, %c0_5, %c0_6], %6 {strides = array<i32>} : memref<1x128x128xf32, #tpu.memory_space<vmem>>, vector<1x128x128xf32>,
    return
  }
  func.func @transform_0(%arg0: i32, %arg1: i32) -> (i32, i32) {
    %c0_i32 = arith.constant 0 : i32
    %c0_i32_0 = arith.constant 0 : i32
    return %arg1, %c0_i32 : i32, i32
  }
  func.func @transform_1(%arg0: i32, %arg1: i32) -> (i32, i32, i32) {
    %c0_i32 = arith.constant 0 : i32
    %c0_i32_0 = arith.constant 0 : i32
    %c0_i32_1 = arith.constant 0 : i32
    return %arg0, %c0_i32, %c0_i32_0 : i32, i32, i32
  }
  func.func @transform_2(%arg0: i32, %arg1: i32) -> (i32, i32, i32) {
    %c0_i32 = arith.constant 0 : i32
    %c0_i32_0 = arith.constant 0 : i32
    return %arg0, %arg1, %c0_i32 : i32, i32, i32
  }
}

</mosaic_0001>

<bundles_post_ra>
// kernel: tpu_custom_call.1
= control target key start
LH: loop header
LB: loop body
LE: loop exit
PB: predicated region body
PF: predicated region fallthrough
CT: control target
= control target key end

     0   :  { %7 = vsyncpa [#allocation3], 0  ;;  %s1112_s0 = inlined_call_operand.hbm [shape: f32[128,128], index: 0, kind: input, shape index: {}]   ;;  %s1113_s1 = inlined_call_operand.hbm [shape: f32[3,128,128], index: 1, kind: input, shape index: {}]   ;;  %s1114_s2 = inlined_call_operand.hbm [shape: f32[3,128,128], index: 2, kind: output, shape index: {}]  }
   0x1   :  { %8 = vsyncpa [#allocation6], 0 }
   0x2   :  { %10 = vsyncpa [#allocation6 + $0x1], 0 }
   0x3   :  { %11 = vsyncpa [#allocation4], 0 }
   0x4   :  { %13 = vsyncpa [#allocation4 + $0x1], 0  ;;  %s886_s9 = smov 0   ;;  %s888_s10 = smov 0  }
   0x5   :  { %s890_s11 = smov 0   ;;  %s892_s12 = smov 0  }
   0x6   :  { %s894_s13 = smov 0   ;;  %s896_s14 = smov 0  }
   0x7 LB: > { %s508_s15 = sadd.s32 4294967295, %s862_s14   ;;  %s509_s16 = sadd.s32 4294967294, %s862_s14   ;;  %s862_s14 = sphi %s896_s14, %s19_s14   ;;  %s858_s13 = sphi %s894_s13, %s1133_s13   ;;  %s854_s12 = sphi %s892_s12, %s1132_s12   ;;  %s850_s11 = sphi %s890_s11, %s1131_s11   ;;  %s846_s10 = sphi %s888_s10, %s1130_s10   ;;  %s842_s9 = sphi %s886_s9, %s1129_s9  }
   0x8   : > { %p77_p0 = scmp.ne.s32.totalorder %s846_s10, %s842_s9  ;;  %p920_p1 = scmp.eq.s32.totalorder %s508_s15, 0 }
   0x9   : > { %p924_p2 = scmp.eq.s32.totalorder %s508_s15, 2  ;;  %p109_p3 = scmp.eq.s32.totalorder %s509_s16, 2 }
   0xa   : > { %p930_p4 = por %p920_p1, %p77_p0  ;;  %p510_p5 = scmp.ge.s32.totalorder %s862_s14, 1 }
   0xb   : > { %p935_p6 = por %p109_p3, %p77_p0  ;;  %p116_p7 = scmp.lt.s32.totalorder %s862_s14, 4 }
   0xc   : > { %s864_s22 = smov [#allocation2]   ;;  %s31_s25 = sadd.s32 1, %s858_s13 }
   0xd   : > { %s1120_s20 = scalar_select %p935_p6, 1, 0 }
   0xe   : > { %p940_p8 = pnand %p510_p5, %p116_p7  ;;  %s131_s23 = sshll.u32 %s864_s22, 4  ;;  %s132_s23 = int_to_ptr.vmem [resolvable:$true] %s131_s23 }
   0xf   : > { %s735_s26 = scalar_lea.vmem %s132_s23, 2048  ;;  %p743_p3 = scmp.lt.s32.totalorder %s132_s23, %s132_s23 }
  0x10   : > { %p655_p9 = pneg %p940_p8  ;;  %p736_p12 = scmp.ne.s32.totalorder %s132_s23, %s735_s26 }
  0x11   : > { %p744_p5 = scmp.lt.s32.totalorder %s735_s26, %s735_s26 }
  0x12   : > { %p948_p10 = pnand %p655_p9, %p920_p1 }
  0x13   : > { %p745_p7 = por %p744_p5, %p743_p3 }
  0x14   : > { %p726_p11 = pneg %p948_p10 }
  0x16   : > { %p738_p13 = pnand %p736_p12, %p726_p11 }
  0x18   : > { %p739_p0 = pneg %p738_p13 }
  0x1a   : > { %p746_p6 = pnand %p745_p7, %p739_p0 }
  0x1c   : > { %749 = shalt.err (!%p746_p6)
}
  0x1d   : > { %s1115_s27 = smov 128   ;;  %s866_s28 = smov 8  }
  0x1e   : > { %658 = dma.hbm_to_vmem [thread:$0]  (!%p948_p10), %s1112_s0, 2048, %s132_s23, [#allocation3], %s1115_s27, %s1115_s27, %s866_s28  }
  0x1f   : > { %p33_p6 = scmp.ge.s32.totalorder %s31_s25, 3  ;;  %s64_s3 = sadd.s32 1, %s850_s11 }
  0x20   : > { %p71_p9 = scmp.ne.s32.totalorder %s850_s11, %s846_s10  ;;  %p72_p11 = scmp.eq.s32.totalorder %s862_s14, 0 }
  0x21   : > { %s1135_s25 = smov (%p33_p6, %s31_s25), 0  ;;  %p668_p0 = scmp.lt.s32.totalorder %s862_s14, 3 }
  0x22   : > { %p969_p12 = por %p72_p11, %p71_p9  ;;  %p975_p13 = por %p924_p2, %p71_p9 }
  0x23   : > { %s61_s6 = ssub.s32 %s858_s13, %s1135_s25  ;;  %s145_s7 = sand.u32 1, %s850_s11  }
  0x24   : > { %s1124_s5 = scalar_select %p975_p13, 1, 0 }
  0x25   : > { %p62_p10 = scmp.eq.s32.totalorder %s61_s6, 0  ;;  %s513_s8 = sshll.u32 %s145_s7, 7 }
  0x26   : > { %s525_s16 = sshll.u32 %s858_s13, 11  ;;  %s149_s26 = scalar_lea.vmem [#allocation5], %s513_s8 }
  0x27   : > { %s984_s15 = scalar_select %p62_p10, %s850_s11, %s64_s3  }
  0x28   : > { %s155_s24 = scalar_lea.hbm %s1113_s1, %s525_s16  ;;  %s156_s29 = sshll.u32 %s149_s26, 4  ;;  %s157_s29 = int_to_ptr.vmem [resolvable:$true] %s156_s29 }
  0x29   : > { %p992_p2 = pnand %p668_p0, %p969_p12  ;;  %s146_s30 = scalar_lea.sflag [#allocation6], %s145_s7 }
  0x2a   : > { %s763_s6 = scalar_lea.vmem %s157_s29, 2048  ;;  %s867_s3 = smov [#allocation5]  }
  0x2b   : > { %p752_p3 = pneg %p992_p2  ;;  %p764_p5 = scmp.ne.s32.totalorder %s157_s29, %s763_s6 }
  0x2c   : > { %s768_s27 = sshll.u32 %s867_s3, 4  ;;  %s769_s27 = int_to_ptr.vmem [resolvable:$false] %s768_s27 }
  0x2d   : > { %p766_p7 = pnand %p764_p5, %p752_p3  ;;  %s770_s16 = scalar_lea.vmem %s769_s27, 4096 }
  0x2e   : > { %p771_p9 = scmp.lt.s32.totalorder %s157_s29, %s769_s27  ;;  %p772_p11 = scmp.lt.s32.totalorder %s770_s16, %s763_s6 }
  0x2f   : > { %p767_p6 = pneg %p766_p7 }
  0x30   : > { %p773_p10 = por %p772_p11, %p771_p9 }
  0x32   : > { %p774_p13 = pnand %p773_p10, %p767_p6 }
  0x34   : > { %777 = shalt.err (!%p774_p13)
}
  0x35   : > { %s1126_s4 = smov 128   ;;  %168 = sbr.rel (%p940_p8) target bundleno = 318 (0x13e), region = 28 }
  0x36   : > { %662 = dma.hbm_to_vmem [thread:$0]  (!%p992_p2), %s155_s24, 2048, %s157_s29, %s146_s30, %s1126_s4, %s1126_s4, %s866_s28  }
  0x3a   : > { %829 = dma.done.wait (%p920_p1), [#allocation3], 2048  }
  0x3b   : > { %831 = vsyncadd (%p920_p1), [#allocation3], 4294965248  ;;  %s1010_s27 = sand.u32 1, %s846_s10  }
  0x3c   : > { %s518_s7 = sshll.u32 %s1010_s27, 7  ;;  %s175_s8 = scalar_lea.sflag [#allocation6], %s1010_s27 }
  0x3d   : > { %s1016_s28 = scalar_lea.vmem [#allocation5], %s518_s7 }
  0x3e   : > { %833 = dma.done.wait (%p930_p4), %s175_s8, 2048  }
  0x3f   : > { %835 = vsyncadd (%p930_p4), %s175_s8, 4294965248  ;;  %v232_v0 = vld [vmem:[%s1016_s28 + $0x78] sm:$0xff]  ;;  %v231_v1 = vld [vmem:[%s1016_s28 + $0x70] sm:$0xff]  ;;  %s1040_s17 = scalar_lea.vmem [#allocation7], %s518_s7  ;;  %s526_s19 = sshll.u32 %s854_s12, 11 }
  0x40   : > { %559 = vmatprep.subr.mxu0 %v232_v0  ;;  %615 = vmatprep.subr.mxu1 %v232_v0  ;;  %v230_v2 = vld [vmem:[%s1016_s28 + $0x68] sm:$0xff]  ;;  %v229_v3 = vld [vmem:[%s1016_s28 + $0x60] sm:$0xff]  ;;  %v228_v4 = vld [vmem:[%s1016_s28 + $0x58] sm:$0xff]  ;;  %s410_s21 = sshll.u32 %s1040_s17, 4  ;;  %s1059_s24 = scalar_lea.hbm %s1114_s2, %s526_s19  ;;  %s1061_s21 = int_to_ptr.vmem [resolvable:$true] %s410_s21 }
  0x41   : > { %560 = vmatpush3.msra.mxu0 %v232_v0  ;;  %631 = vmatpush3.msra.mxu1 %v232_v0  ;;  %v227_v5 = vld [vmem:[%s1016_s28 + $0x50] sm:$0xff]  ;;  %v226_v6 = vld [vmem:[%s1016_s28 + $0x48] sm:$0xff]  ;;  %v225_v7 = vld [vmem:[%s1016_s28 + $0x40] sm:$0xff]  ;;  %s395_s12 = scalar_lea.sflag [#allocation4], %s1010_s27  ;;  %s778_s26 = scalar_lea.vmem %s1061_s21, 2048 }
  0x42   : > { %561 = vmatprep.subr.mxu0 %v231_v1  ;;  %616 = vmatprep.subr.mxu1 %v231_v1  ;;  %v224_v8 = vld [vmem:[%s1016_s28 + $0x38] sm:$0xff]  ;;  %v223_v9 = vld [vmem:[%s1016_s28 + $0x30] sm:$0xff]  ;;  %v222_v10 = vld [vmem:[%s1016_s28 + $0x28] sm:$0xff]  ;;  %p779_p1 = scmp.ne.s32.totalorder %s1061_s21, %s778_s26  ;;  %p1127_p4 = scmp.ne.s32.totalorder %s1124_s5, 0 }
  0x43   : > { %562 = vmatpush3.msra.mxu0 %v231_v1  ;;  %632 = vmatpush3.msra.mxu1 %v231_v1  ;;  %v221_v11 = vld [vmem:[%s1016_s28 + $0x20] sm:$0xff]  ;;  %v220_v12 = vld [vmem:[%s1016_s28 + $0x18] sm:$0xff]  ;;  %v219_v13 = vld [vmem:[%s1016_s28 + $0x10] sm:$0xff]  ;;  %s868_s29 = smov [#allocation7]  }
  0x44   : > { %563 = vmatprep.subr.mxu0 %v230_v2  ;;  %617 = vmatprep.subr.mxu1 %v230_v2  ;;  %v218_v14 = vld [vmem:[%s1016_s28 + $0x8] sm:$0xff]  ;;  %v217_v15 = vld [vmem:[%s1016_s28] sm:$0xff]  ;;  %v203_v20 = vld [vmem:[#allocation2 + $0x10] sm:$0xff]  ;;  %p780_p8 = pnand %p779_p1, %p1127_p4  ;;  %s782_s18 = sshll.u32 %s868_s29, 4  ;;  %s783_s18 = int_to_ptr.vmem [resolvable:$false] %s782_s18 }
  0x45   : > { %564 = vmatpush3.msra.mxu0 %v230_v2  ;;  %633 = vmatpush3.msra.mxu1 %v230_v2  ;;  %v201_v16 = vld [vmem:[#allocation2] sm:$0xff]  ;;  %v202_v18 = vld [vmem:[#allocation2 + $0x8] sm:$0xff]  ;;  %v211_v21 = vld [vmem:[#allocation2 + $0x50] sm:$0xff]  ;;  %s784_s30 = scalar_lea.vmem %s783_s18, 4096  ;;  %p785_p13 = scmp.lt.s32.totalorder %s1061_s21, %s783_s18 }
  0x46   : > { %565 = vmatprep.subr.mxu0 %v229_v3  ;;  %618 = vmatprep.subr.mxu1 %v229_v3  ;;  %v209_v17 = vld [vmem:[#allocation2 + $0x40] sm:$0xff]  ;;  %v210_v19 = vld [vmem:[#allocation2 + $0x48] sm:$0xff]  ;;  %v204_v22 = vld [vmem:[#allocation2 + $0x18] sm:$0xff]  ;;  %p781_p12 = pneg %p780_p8  ;;  %p786_p0 = scmp.lt.s32.totalorder %s784_s30, %s778_s26 }
  0x47   : > { %566 = vmatpush3.msra.mxu0 %v229_v3  ;;  %634 = vmatpush3.msra.mxu1 %v229_v3  ;;  %v212_v23 = vld [vmem:[#allocation2 + $0x58] sm:$0xff]  ;;  %v205_v24 = vld [vmem:[#allocation2 + $0x20] sm:$0xff]  ;;  %v206_v26 = vld [vmem:[#allocation2 + $0x28] sm:$0xff] }
  0x48   : > { %567 = vmatprep.subr.mxu0 %v228_v4  ;;  %619 = vmatprep.subr.mxu1 %v228_v4  ;;  %v213_v25 = vld [vmem:[#allocation2 + $0x60] sm:$0xff]  ;;  %v214_v27 = vld [vmem:[#allocation2 + $0x68] sm:$0xff]  ;;  %v207_v28 = vld [vmem:[#allocation2 + $0x30] sm:$0xff]  ;;  %p787_p2 = por %p786_p0, %p785_p13 }
  0x49   : > { %568 = vmatpush3.msra.mxu0 %v228_v4  ;;  %635 = vmatpush3.msra.mxu1 %v228_v4  ;;  %v215_v29 = vld [vmem:[#allocation2 + $0x70] sm:$0xff]  ;;  %v208_v30 = vld [vmem:[#allocation2 + $0x38] sm:$0xff] }
  0x4a   : > { %569 = vmatprep.subr.mxu0 %v227_v5  ;;  %620 = vmatprep.subr.mxu1 %v227_v5  ;;  %v216_v31 = vld [vmem:[#allocation2 + $0x78] sm:$0xff]  ;;  %p788_p3 = pnand %p787_p2, %p781_p12 }
  0x4b   : > { %570 = vmatpush3.msra.mxu0 %v227_v5  ;;  %636 = vmatpush3.msra.mxu1 %v227_v5 }
  0x4c   : > { %571 = vmatprep.subr.mxu0 %v226_v6  ;;  %621 = vmatprep.subr.mxu1 %v226_v6 }
  0x4d   : > { %572 = vmatpush3.msra.mxu0 %v226_v6  ;;  %637 = vmatpush3.msra.mxu1 %v226_v6 }
  0x4e   : > { %573 = vmatprep.subr.mxu0 %v225_v7  ;;  %622 = vmatprep.subr.mxu1 %v225_v7 }
  0x4f   : > { %574 = vmatpush3.msra.mxu0 %v225_v7  ;;  %638 = vmatpush3.msra.mxu1 %v225_v7 }
  0x50   : > { %575 = vmatprep.subr.mxu0 %v224_v8  ;;  %623 = vmatprep.subr.mxu1 %v224_v8 }
  0x51   : > { %576 = vmatpush3.msra.mxu0 %v224_v8  ;;  %639 = vmatpush3.msra.mxu1 %v224_v8 }
  0x52   : > { %577 = vmatprep.subr.mxu0 %v223_v9  ;;  %624 = vmatprep.subr.mxu1 %v223_v9 }
  0x53   : > { %578 = vmatpush3.msra.mxu0 %v223_v9  ;;  %640 = vmatpush3.msra.mxu1 %v223_v9 }
  0x54   : > { %579 = vmatprep.subr.mxu0 %v222_v10  ;;  %625 = vmatprep.subr.mxu1 %v222_v10 }
  0x55   : > { %580 = vmatpush3.msra.mxu0 %v222_v10  ;;  %641 = vmatpush3.msra.mxu1 %v222_v10 }
  0x56   : > { %581 = vmatprep.subr.mxu0 %v221_v11  ;;  %626 = vmatprep.subr.mxu1 %v221_v11 }
  0x57   : > { %582 = vmatpush3.msra.mxu0 %v221_v11  ;;  %642 = vmatpush3.msra.mxu1 %v221_v11 }
  0x58   : > { %583 = vmatprep.subr.mxu0 %v220_v12  ;;  %627 = vmatprep.subr.mxu1 %v220_v12 }
  0x59   : > { %584 = vmatpush3.msra.mxu0 %v220_v12  ;;  %643 = vmatpush3.msra.mxu1 %v220_v12 }
  0x5a   : > { %585 = vmatprep.subr.mxu0 %v219_v13  ;;  %628 = vmatprep.subr.mxu1 %v219_v13 }
  0x5b   : > { %586 = vmatpush3.msra.mxu0 %v219_v13  ;;  %644 = vmatpush3.msra.mxu1 %v219_v13 }
  0x5c   : > { %587 = vmatprep.subr.mxu0 %v218_v14  ;;  %629 = vmatprep.subr.mxu1 %v218_v14 }
  0x5d   : > { %588 = vmatpush3.msra.mxu0 %v218_v14  ;;  %645 = vmatpush3.msra.mxu1 %v218_v14 }
  0x5e   : > { %589 = vmatprep.subr.mxu0 %v217_v15  ;;  %630 = vmatprep.subr.mxu1 %v217_v15 }
  0x5f   : > { %590 = vmatpush3.msra.mxu0 %v217_v15  ;;  %646 = vmatpush3.msra.mxu1 %v217_v15 }
  0x60   : > { %591 = vmatprep.mubr.f32.mxu0 %v201_v16  ;;  %603 = vmatprep.mubr.f32.mxu1 %v209_v17 }
  0x61   : > { %592 = vmatmul.mubr.f32.vlgmr.msra.gmra.mxu0 %v202_v18  ;;  %604 = vmatmul.mubr.f32.vlgmr.msra.gmra.mxu1 %v210_v19 }
  0x62   : > { %594 = vmatprep.mubr.f32.mxu0 %v203_v20  ;;  %606 = vmatprep.mubr.f32.mxu1 %v211_v21 }
  0x65   : > { %595 = vmatmul.mubr.f32.gmra.mxu0 %v204_v22  ;;  %607 = vmatmul.mubr.f32.gmra.mxu1 %v212_v23 }
  0x66   : > { %597 = vmatprep.mubr.f32.mxu0 %v205_v24  ;;  %609 = vmatprep.mubr.f32.mxu1 %v213_v25 }
  0x69   : > { %598 = vmatmul.mubr.f32.gmra.mxu0 %v206_v26  ;;  %610 = vmatmul.mubr.f32.gmra.mxu1 %v214_v27 }
  0x6a   : > { %600 = vmatprep.mubr.f32.mxu0 %v207_v28  ;;  %612 = vmatprep.mubr.f32.mxu1 %v215_v29 }
  0x6d   : > { %601 = vmatmul.mubr.f32.gmra.mxu0 %v208_v30  ;;  %613 = vmatmul.mubr.f32.gmra.mxu1 %v216_v31 }
 0x121   : > { %v593_v32 = vpop.f32.mrf.mxu0  ;;  %v605_v33 = vpop.f32.mrf.mxu1 }
 0x122   : > { %379 = vst [vmem:[%s1040_s17 + $0x8] sm:$0xff] %v593_v32  ;;  %387 = vst [vmem:[%s1040_s17 + $0x48] sm:$0xff] %v605_v33 }
 0x123   : > { %v299_v34 = vpop.f32.mrf.mxu0  ;;  %v339_v35 = vpop.f32.mrf.mxu1 }
 0x124   : > { %378 = vst [vmem:[%s1040_s17] sm:$0xff] %v299_v34  ;;  %386 = vst [vmem:[%s1040_s17 + $0x40] sm:$0xff] %v339_v35 }
 0x125   : > { %v596_v36 = vpop.f32.mrf.mxu0  ;;  %v608_v37 = vpop.f32.mrf.mxu1 }
 0x126   : > { %381 = vst [vmem:[%s1040_s17 + $0x18] sm:$0xff] %v596_v36  ;;  %389 = vst [vmem:[%s1040_s17 + $0x58] sm:$0xff] %v608_v37 }
 0x127   : > { %v309_v38 = vpop.f32.mrf.mxu0  ;;  %v349_v39 = vpop.f32.mrf.mxu1 }
 0x128   : > { %380 = vst [vmem:[%s1040_s17 + $0x10] sm:$0xff] %v309_v38  ;;  %388 = vst [vmem:[%s1040_s17 + $0x50] sm:$0xff] %v349_v39 }
 0x129   : > { %v599_v40 = vpop.f32.mrf.mxu0  ;;  %v611_v41 = vpop.f32.mrf.mxu1 }
 0x12a   : > { %383 = vst [vmem:[%s1040_s17 + $0x28] sm:$0xff] %v599_v40  ;;  %391 = vst [vmem:[%s1040_s17 + $0x68] sm:$0xff] %v611_v41 }
 0x12b   : > { %v319_v42 = vpop.f32.mrf.mxu0  ;;  %v359_v43 = vpop.f32.mrf.mxu1 }
 0x12c   : > { %382 = vst [vmem:[%s1040_s17 + $0x20] sm:$0xff] %v319_v42  ;;  %390 = vst [vmem:[%s1040_s17 + $0x60] sm:$0xff] %v359_v43 }
 0x12d   : > { %v602_v44 = vpop.f32.mrf.mxu0  ;;  %v614_v45 = vpop.f32.mrf.mxu1 }
 0x12e   : > { %385 = vst [vmem:[%s1040_s17 + $0x38] sm:$0xff] %v602_v44  ;;  %393 = vst [vmem:[%s1040_s17 + $0x78] sm:$0xff] %v614_v45 }
 0x12f   : > { %v329_v46 = vpop.f32.mrf.mxu0  ;;  %v369_v47 = vpop.f32.mrf.mxu1 }
 0x130   : > { %384 = vst [vmem:[%s1040_s17 + $0x30] sm:$0xff] %v329_v46  ;;  %392 = vst [vmem:[%s1040_s17 + $0x70] sm:$0xff] %v369_v47 }
 0x131   : > { %791 = shalt.err (!%p788_p3)
}
 0x132   : > { %s792_s6 = scalar_lea.hbm %s1059_s24, 2048  ;;  %s796_s4 = scalar_lea.hbm %s1114_s2, 6144 }
 0x133   : > { %p793_p5 = scmp.ne.s32.totalorder %s1059_s24, %s792_s6  ;;  %p797_p9 = scmp.lt.s32.totalorder %s1059_s24, %s1114_s2 }
 0x134   : > { %p798_p11 = scmp.lt.s32.totalorder %s796_s4, %s792_s6 }
 0x135   : > { %p794_p7 = pnand %p793_p5, %p1127_p4 }
 0x136   : > { %p799_p10 = por %p798_p11, %p797_p9 }
 0x137   : > { %p795_p6 = pneg %p794_p7 }
 0x139   : > { %p800_p1 = pnand %p799_p10, %p795_p6 }
 0x13b   : > { %803 = shalt.err (!%p800_p1)
}
 0x13c   : > { %s869_s28 = smov 128   ;;  %s870_s17 = smov 8  }
 0x13d   : > { %653 = dma.vmem_to_hbm [thread:$0]  (%p1127_p4), %s1061_s21, 2048, %s1059_s24, %s395_s12, %s869_s28, %s869_s28, %s870_s17  }
 0x13e PF: > { %p670_p8 = scmp.ge.s32.totalorder %s862_s14, 2  ;;  %s425_s19 = sand.u32 1, %s842_s9  }
 0x13f   : > { %p1128_p12 = scmp.ne.s32.totalorder %s1120_s20, 0  ;;  %s426_s22 = scalar_lea.sflag [#allocation4], %s425_s19 }
 0x141   : > { %p664_p13 = pnand %p670_p8, %p1128_p12 }
 0x143   : > { %p665_p0 = pneg %p664_p13 }
 0x145   : > { %837 = dma.done.wait (%p665_p0), %s426_s22, 2048  }
 0x146   : > { %839 = vsyncadd (%p665_p0), %s426_s22, 4294965248  ;;  %s19_s14 = sadd.s32 1, %s862_s14   ;;  %s1129_s9 = smov %s846_s10 }
 0x147   : > { %p16_p2 = scmp.ge.s32.totalorder %s19_s14, 5   ;;  %s1130_s10 = smov %s850_s11 }
 0x148   : > { %s1131_s11 = smov %s984_s15  ;;  %s1132_s12 = smov %s858_s13 }
 0x149   : > { %s1133_s13 = smov %s1135_s25  ;;  %18 = sbr.rel (!%p16_p2) target bundleno = 7 (0x7), region = 79 }
 0x14e   :  { %431 = vsyncpa [#allocation3], 1 }
 0x14f   :  { %433 = vsyncpa [#allocation3 + $0x1], 1 }
 0x150   :  { %434 = vsyncpa [#allocation6], 1 }
 0x151   :  { %436 = vsyncpa [#allocation6 + $0x1], 1 }
 0x152   :  { %437 = vsyncpa [#allocation4], 1 }
 0x153   :  { %439 = vsyncpa [#allocation4 + $0x1], 1 }

</bundles_post_ra>
